<compile_context>
chip_gen: v7x
topology: tpu7x:2x2x1
jax: 0.10.0
libtpu: 0.0.40
codegen_flags: <defaults>
</compile_context>

<pallas_src>
import functools

import jax
import jax.numpy as jnp
from jax.experimental import pallas as pl
from jax.experimental.pallas import tpu as pltpu  # noqa: F401  (TPU backend)


def _fused_mlp_kernel(x_ref, w_in_ref, b_in_ref, w_h_ref, b_h_ref,
                      w_out_ref, b_out_ref, o_ref, *, n_layers: int):
    """Entire MLP forward in a single kernel invocation.

    x_ref     : (B, 12)          input activations
    w_in_ref  : (12, dim)        fc_in weight
    b_in_ref  : (1, dim)         fc_in bias
    w_h_ref   : (L', dim, dim)   stacked hidden weights (L' = max(layers, 1))
    b_h_ref   : (L', dim)        stacked hidden biases
    w_out_ref : (dim, 6)         fc_out weight
    b_out_ref : (1, 6)           fc_out bias
    o_ref     : (B, 6)           output
    """
    # fc_in + ReLU (accumulate in f32 on the MXU).
    h = jnp.dot(x_ref[...], w_in_ref[...], preferred_element_type=jnp.float32)
    h = jnp.maximum(h + b_in_ref[...], 0.0)

    # Hidden layers: statically unrolled; activations never leave vregs/VMEM.
    for i in range(n_layers):
        h = jnp.dot(h, w_h_ref[i], preferred_element_type=jnp.float32)
        h = jnp.maximum(h + b_h_ref[i:i + 1, :], 0.0)

    # fc_out (no ReLU) — single cast at the final store.
    y = jnp.dot(h, w_out_ref[...], preferred_element_type=jnp.float32)
    y = y + b_out_ref[...]
    o_ref[...] = y.astype(o_ref.dtype)


def mlp_forward(params, x):
    """Fused-Pallas forward.  x: (B, 12) -> (B, 6)."""
    w_in, b_in = params["w_in"], params["b_in"]
    w_h, b_h = params["w_h"], params["b_h"]
    w_out, b_out = params["w_out"], params["b_out"]
    n_layers = params["n_layers"]

    B = x.shape[0]
    out_dim = w_out.shape[1]
    b_in2 = b_in.reshape(1, -1)
    b_out2 = b_out.reshape(1, -1)

    kernel = functools.partial(_fused_mlp_kernel, n_layers=n_layers)

    def full(a):
        # Full-array block, single (gridless) program: everything lives in VMEM.
        return pl.BlockSpec(a.shape, lambda *_: (0,) * a.ndim)

    return pl.pallas_call(
        kernel,
        out_shape=jax.ShapeDtypeStruct((B, out_dim), x.dtype),
        in_specs=[full(x), full(w_in), full(b_in2), full(w_h), full(b_h),
                  full(w_out), full(b_out2)],
        out_specs=pl.BlockSpec((B, out_dim), lambda *_: (0, 0)),
    )(x, w_in, b_in2, w_h, b_h, w_out, b_out2)


def init_mlp_params(key, layers: int, dim: int, in_dim: int = 12, out_dim: int = 6):
    """Deterministic init mimicking nn.Linear's U(-1/sqrt(fan_in), 1/sqrt(fan_in)).

    Hidden-layer params are stored stacked ((layers, dim, dim) / (layers, dim))
    so the fused kernel gets two inputs instead of 2*layers tiny ones.
    """
    def linear_init(k, fan_in, fan_out):
        kw, kb = jax.random.split(k)
        bound = 1.0 / jnp.sqrt(fan_in)
        w = jax.random.uniform(kw, (fan_in, fan_out), jnp.float32, -bound, bound)
        b = jax.random.uniform(kb, (fan_out,), jnp.float32, -bound, bound)
        return w, b

    keys = jax.random.split(key, layers + 2)
    w_in, b_in = linear_init(keys[0], in_dim, dim)
    hidden = [linear_init(keys[1 + i], dim, dim) for i in range(layers)]
    w_out, b_out = linear_init(keys[layers + 1], dim, out_dim)

    if layers > 0:
        w_h = jnp.stack([w for (w, _) in hidden])   # (layers, dim, dim)
        b_h = jnp.stack([b for (_, b) in hidden])   # (layers, dim)
    else:
        # Dummy (unused) stacks keep the kernel signature static.
        w_h = jnp.zeros((1, dim, dim), jnp.float32)
        b_h = jnp.zeros((1, dim), jnp.float32)

    return {
        "w_in": w_in, "b_in": b_in,
        "w_h": w_h, "b_h": b_h,
        "w_out": w_out, "b_out": b_out,
        "n_layers": layers,
    }


def mlp_reference(params, x):
    """Pure-JAX reference for correctness check."""
    x = jnp.maximum(x @ params["w_in"] + params["b_in"], 0.0)
    for i in range(params["n_layers"]):
        x = jnp.maximum(x @ params["w_h"][i] + params["b_h"][i], 0.0)
    return x @ params["w_out"] + params["b_out"]


if __name__ == "__main__":
    key = jax.random.PRNGKey(0)
    k_param, k_x = jax.random.split(key)

    # args.layers = 2, args.dim = 32 ; input features fixed at 12, output at 6.
    layers, dim, batch = 2, 32, 8
    params = init_mlp_params(k_param, layers=layers, dim=dim)
    x = jax.random.normal(k_x, (batch, 12), jnp.float32)

    out = mlp_forward(params, x)
    out = jax.block_until_ready(out)

    ref = mlp_reference(params, x)
    assert out.shape == (batch, 6), out.shape
    assert jnp.allclose(out, ref, atol=1e-5, rtol=1e-5), "mismatch vs reference"
    print("KERNEL_OK")
</pallas_src>

<mosaic_0001>
module attributes {stable_mosaic.version = 11 : i64} {
  func.func @_fused_mlp_kernel(%arg0: memref<8x12xf32, #tpu.memory_space<vmem>>, %arg1: memref<12x32xf32, #tpu.memory_space<vmem>>, %arg2: memref<1x32xf32, #tpu.memory_space<vmem>>, %arg3: memref<2x32x32xf32, #tpu.memory_space<vmem>>, %arg4: memref<2x32xf32, #tpu.memory_space<vmem>>, %arg5: memref<32x6xf32, #tpu.memory_space<vmem>>, %arg6: memref<1x6xf32, #tpu.memory_space<vmem>>, %arg7: memref<8x6xf32, #tpu.memory_space<vmem>>) attributes {dimension_semantics = [], scalar_prefetch = 0 : i64, scratch_operands = 0 : i64, tpu.core_type = #tpu.core_type<tc>} {
    %c0 = arith.constant 0 : index
    %c0_0 = arith.constant 0 : index
    %0 = vector.load %arg0[%c0, %c0_0] : memref<8x12xf32, #tpu.memory_space<vmem>>, vector<8x12xf32>
    %c0_1 = arith.constant 0 : index
    %c0_2 = arith.constant 0 : index
    %1 = vector.load %arg1[%c0_1, %c0_2] : memref<12x32xf32, #tpu.memory_space<vmem>>, vector<12x32xf32>
    %cst = arith.constant dense<0.000000e+00> : vector<8x32xf32>
    %2 = tpu.matmul %0, %1, %cst {dimension_numbers = #tpu.dot_dimension_numbers<[1], [0], [0], [1], [0, 0, 1, 1], [], []>} : vector<8x12xf32>, vector<12x32xf32>, vector<8x32xf32> -> vector<8x32xf32>
    %c0_3 = arith.constant 0 : index
    %c0_4 = arith.constant 0 : index
    %3 = vector.load %arg2[%c0_3, %c0_4] : memref<1x32xf32, #tpu.memory_space<vmem>>, vector<1x32xf32>
    %4 = vector.broadcast %3 : vector<1x32xf32> to vector<8x32xf32>
    %5 = arith.addf %2, %4 : vector<8x32xf32>
    %cst_5 = arith.constant 0.000000e+00 : f32
    %6 = vector.broadcast %cst_5 : f32 to vector<8x32xf32>
    %7 = arith.maximumf %5, %6 : vector<8x32xf32>
    %c0_6 = arith.constant 0 : index
    %c0_7 = arith.constant 0 : index
    %c0_8 = arith.constant 0 : index
    %8 = vector.load %arg3[%c0_6, %c0_7, %c0_8] : memref<2x32x32xf32, #tpu.memory_space<vmem>>, vector<1x32x32xf32>
    %9 = vector.shape_cast %8 : vector<1x32x32xf32> to vector<32x32xf32>
    %cst_9 = arith.constant dense<0.000000e+00> : vector<8x32xf32>
    %10 = tpu.matmul %7, %9, %cst_9 {dimension_numbers = #tpu.dot_dimension_numbers<[1], [0], [0], [1], [0, 0, 1, 1], [], []>} : vector<8x32xf32>, vector<32x32xf32>, vector<8x32xf32> -> vector<8x32xf32>
    %c0_10 = arith.constant 0 : index
    %c0_11 = arith.constant 0 : index
    %11 = vector.load %arg4[%c0_10, %c0_11] : memref<2x32xf32, #tpu.memory_space<vmem>>, vector<1x32xf32>
    %12 = vector.broadcast %11 : vector<1x32xf32> to vector<8x32xf32>
    %13 = arith.addf %10, %12 : vector<8x32xf32>
    %cst_12 = arith.constant 0.000000e+00 : f32
    %14 = vector.broadcast %cst_12 : f32 to vector<8x32xf32>
    %15 = arith.maximumf %13, %14 : vector<8x32xf32>
    %c1 = arith.constant 1 : index
    %c0_13 = arith.constant 0 : index
    %c0_14 = arith.constant 0 : index
    %16 = vector.load %arg3[%c1, %c0_13, %c0_14] : memref<2x32x32xf32, #tpu.memory_space<vmem>>, vector<1x32x32xf32>
    %17 = vector.shape_cast %16 : vector<1x32x32xf32> to vector<32x32xf32>
    %cst_15 = arith.constant dense<0.000000e+00> : vector<8x32xf32>
    %18 = tpu.matmul %15, %17, %cst_15 {dimension_numbers = #tpu.dot_dimension_numbers<[1], [0], [0], [1], [0, 0, 1, 1], [], []>} : vector<8x32xf32>, vector<32x32xf32>, vector<8x32xf32> -> vector<8x32xf32>
    %c1_16 = arith.constant 1 : index
    %c0_17 = arith.constant 0 : index
    %19 = vector.load %arg4[%c1_16, %c0_17] : memref<2x32xf32, #tpu.memory_space<vmem>>, vector<1x32xf32>
    %20 = vector.broadcast %19 : vector<1x32xf32> to vector<8x32xf32>
    %21 = arith.addf %18, %20 : vector<8x32xf32>
    %cst_18 = arith.constant 0.000000e+00 : f32
    %22 = vector.broadcast %cst_18 : f32 to vector<8x32xf32>
    %23 = arith.maximumf %21, %22 : vector<8x32xf32>
    %c0_19 = arith.constant 0 : index
    %c0_20 = arith.constant 0 : index
    %24 = vector.load %arg5[%c0_19, %c0_20] : memref<32x6xf32, #tpu.memory_space<vmem>>, vector<32x6xf32>
    %cst_21 = arith.constant dense<0.000000e+00> : vector<8x6xf32>
    %25 = tpu.matmul %23, %24, %cst_21 {dimension_numbers = #tpu.dot_dimension_numbers<[1], [0], [0], [1], [0, 0, 1, 1], [], []>} : vector<8x32xf32>, vector<32x6xf32>, vector<8x6xf32> -> vector<8x6xf32>
    %c0_22 = arith.constant 0 : index
    %c0_23 = arith.constant 0 : index
    %26 = vector.load %arg6[%c0_22, %c0_23] : memref<1x6xf32, #tpu.memory_space<vmem>>, vector<1x6xf32>
    %27 = vector.broadcast %26 : vector<1x6xf32> to vector<8x6xf32>
    %28 = arith.addf %25, %27 : vector<8x6xf32>
    %c0_24 = arith.constant 0 : index
    %c0_25 = arith.constant 0 : index
    %29 = vector.load %arg7[%c0_24, %c0_25] : memref<8x6xf32, #tpu.memory_space<vmem>>, vector<8x6xf32>
    tpu.vector_store %arg7[%c0_24, %c0_25], %28 {strides = array<i32>} : memref<8x6xf32, #tpu.memory_space<vmem>>, vector<8x6xf32>,
    return
  }
}

</mosaic_0001>

<bundles_post_ra>
// kernel: tpu_custom_call.1
= control target key start
LH: loop header
LB: loop body
LE: loop exit
PB: predicated region body
PF: predicated region fallthrough
CT: control target
= control target key end

     0   :  { %12 = vsyncpa [#allocation3], 0  ;;  %s656_s0 = inlined_call_operand.vmem [shape: f32[8,12], index: 0, kind: input, shape index: {}]   ;;  %s657_s1 = inlined_call_operand.vmem [shape: f32[12,32], index: 1, kind: input, shape index: {}]   ;;  %s658_s2 = inlined_call_operand.vmem [shape: f32[1,32], index: 2, kind: input, shape index: {}]   ;;  %s659_s3 = inlined_call_operand.hbm [shape: f32[2,32,32], index: 3, kind: input, shape index: {}]   ;;  %s660_s4 = inlined_call_operand.vmem [shape: f32[2,32], index: 4, kind: input, shape index: {}]   ;;  %s661_s5 = inlined_call_operand.vmem [shape: f32[32,6], index: 5, kind: input, shape index: {}]   ;;  %s662_s6 = inlined_call_operand.vmem [shape: f32[1,6], index: 6, kind: input, shape index: {}]   ;;  %s663_s7 = inlined_call_operand.hbm [shape: f32[8,6], index: 7, kind: output, shape index: {}]  }
   0x1   :  { %13 = vsyncpa [#allocation4], 0  ;;  %s544_s24 = smov [#allocation2]   ;;  %s496_s28 = scalar_lea.hbm %s659_s3, 1024 }
   0x2   :  { %s25_s25 = sshll.u32 %s544_s24, 4  ;;  %p497_p0 = scmp.ne.s32.totalorder %s659_s3, %s496_s28  ;;  %s26_s25 = int_to_ptr.vmem [resolvable:$true] %s25_s25 }
   0x3   :  { %p500_p1 = scmp.lt.u32.totalorder %s496_s28, %s659_s3 }
   0x5   :  { %p502_p2 = pnand %p500_p1, %p497_p0 }
   0x7   :  { %505 = shalt.err (!%p502_p2)
}
   0x8   :  { %s506_s10 = scalar_lea.vmem %s26_s25, 1024  ;;  %p511_p4 = scmp.lt.s32.totalorder %s26_s25, %s26_s25 }
   0x9   :  { %p507_p3 = scmp.ne.s32.totalorder %s26_s25, %s506_s10  ;;  %p512_p5 = scmp.lt.s32.totalorder %s506_s10, %s506_s10 }
   0xb   :  { %p513_p6 = por %p512_p5, %p511_p4 }
   0xd   :  { %p514_p7 = pnand %p513_p6, %p507_p3 }
   0xf   :  { %517 = shalt.err (!%p514_p7)
}
  0x10   :  { %s545_s11 = smov 128   ;;  %s546_s12 = smov 8  }
  0x11   :  { %31 = dma.hbm_to_vmem [thread:$0]  %s659_s3, 1024, %s26_s25, [#allocation3], %s545_s11, %s545_s11, %s546_s12  }
  0x12   :  { %540 = dma.done.wait [#allocation3], 1024  }
  0x13   :  { %541 = vsyncadd [#allocation3], 4294966272  ;;  %v547_v0 = vmov 0.0|0.0   ;;  %vm548_vm0 = vmmov 0   ;;  %v549_v1 = vmov 0.0   ;;  %vm55_vm1 = vcmask 1043456  }
  0x14   :  { %466 = vmatprep.subr.bf16.mxu0 %v547_v0  ;;  %470 = vmatprep.subr.bf16.mxu1 %v547_v0  ;;  %v42_v2 = vld [vmem:[%s657_s1] sm:$0xff]  ;;  %v43_v3 = vld [vmem:[%s657_s1 + $0x8] sm:$0xf]  ;;  %vm550_vm2 = vmmov 1   ;;  %vm51_vm4 = vcmask 97280   ;;  %v132_v9 = vld [vmem:[#allocation2 + $0x10] sm:$0xff] }
  0x15   :  { %430 = vmatprep.mubr.msk.f32.mxu0 %vm548_vm0, %v549_v1  ;;  %441 = vmatprep.mubr.msk.f32.mxu1 %vm548_vm0, %v549_v1  ;;  %vm468_vm3 = vmpackc.low %vm55_vm1, %vm550_vm2  ;;  %v467_v4 = vpack.c.bf16 %v43_v3, %v42_v2  ;;  %v130_v5 = vld [vmem:[#allocation2] sm:$0xff]  ;;  %v131_v6 = vld [vmem:[#allocation2 + $0x8] sm:$0xff]  ;;  %vm139_vm5 = vcmask 261120   ;;  %s551_s10 = smov [#allocation5]   ;;  %vm382_vm6 = vcmask 48128  }
  0x16   :  { %v471_v7 = vpack.c.bf16 %v131_v6, %v130_v5  ;;  %v41_v8 = vld [vmem:[%s656_s0] sm:$0xff]  ;;  %v133_v10 = vld [vmem:[#allocation2 + $0x18] sm:$0xff]  ;;  %v216_v13 = vld [vmem:[#allocation2 + $0x28] sm:$0xff]  ;;  %s390_s11 = sshll.u32 %s551_s10, 4  ;;  %s391_s11 = int_to_ptr.vmem [resolvable:$true] %s390_s11 }
  0x17   :  { %469 = vmatpush3.bf16.msk.msra.mxu0 %vm468_vm3, %v467_v4  ;;  %v474_v11 = vpack.c.bf16 %v133_v10, %v132_v9  ;;  %v215_v12 = vld [vmem:[#allocation2 + $0x20] sm:$0xff]  ;;  %v217_v20 = vld [vmem:[#allocation2 + $0x30] sm:$0xff]  ;;  %v218_v21 = vld [vmem:[#allocation2 + $0x38] sm:$0xff]  ;;  %p523_p9 = scmp.lt.s32.totalorder %s391_s11, %s391_s11 }
  0x18   :  { %472 = vmatpush3.bf16.msra.mxu1 %v471_v7  ;;  %476 = vmatprep.subr.bf16.mxu0 %v547_v0  ;;  %v477_v14 = vpack.c.bf16 %v216_v13, %v215_v12  ;;  %v399_v15 = vld [vmem:[%s658_s2] ss:$0 sm:$0xff]  ;;  %v480_v22 = vpack.c.bf16 %v218_v21, %v217_v20  ;;  %v299_v24 = vld [vmem:[%s661_s5 + $0x8] sm:$0xff]  ;;  %v300_v31 = vld [vmem:[%s661_s5 + $0x10] sm:$0xff] }
  0x19   :  { %473 = vmatprep.subr.bf16.mxu1 %v547_v0  ;;  %v298_v23 = vld [vmem:[%s661_s5] sm:$0xff]  ;;  %v301_v32 = vld [vmem:[%s661_s5 + $0x18] sm:$0xff]  ;;  %s518_s5 = scalar_lea.vmem %s391_s11, 128 }
  0x1a   :  { %431 = vmatmul.mubr.msk.f32.vlgmr.msra.gmra.mrb[0].mxu0 %vm51_vm4, %v41_v8  ;;  %v483_v25 = vpack.c.bf16 %v299_v24, %v298_v23  ;;  %v402_v26 = vld [vmem:[%s660_s4] ss:$0 sm:$0xff]  ;;  %v486_v33 = vpack.c.bf16 %v301_v32, %v300_v31  ;;  %v404_v34 = vld [vmem:[%s660_s4 + $0x1] ss:$0 sm:$0xff]  ;;  %p519_p8 = scmp.ne.s32.totalorder %s391_s11, %s518_s5  ;;  %p524_p10 = scmp.lt.s32.totalorder %s518_s5, %s518_s5 }
  0x1b   :  { %452 = vmatprep.mubr.msk.f32.mxu0 %vm548_vm0, %v549_v1  ;;  %478 = vmatpush3.bf16.msra.mxu0 %v477_v14  ;;  %v406_v39 = vld [vmem:[%s662_s6] ss:$0 sm:$0xff] }
  0x1c   :  { %475 = vmatpush3.bf16.msra.mxu1 %v474_v11  ;;  %479 = vmatprep.subr.bf16.mxu0 %v547_v0  ;;  %p525_p11 = por %p524_p10, %p523_p9 }
  0x1d   :  { %482 = vmatprep.subr.bf16.mxu1 %v547_v0 }
  0x1e   :  { %p526_p12 = pnand %p525_p11, %p519_p8 }
  0x1f   :  { %481 = vmatpush3.bf16.msra.mxu0 %v480_v22 }
  0xed   :  { %v125_v16 = vpop.f32.mrb[0].mxu0 }
  0xee   :  { %v126_v17 = vadd.f32 %v399_v15, %v125_v16  ;;  %v432_v18 = vpop.f32.mrb[1].mxu0 }
  0xf0   :  { %v129_v19 = vmax.f32 %v126_v17, 0.0 }
  0xf2   :  { %442 = vmatmul.mubr.msk.f32.vlgmr.msra.gmra.mrb[0].mxu1 %vm139_vm5, %v129_v19 }
  0xf3   :  { %463 = vmatprep.mubr.msk.f32.mxu1 %vm548_vm0, %v549_v1  ;;  %484 = vmatpush3.bf16.msra.mxu1 %v483_v25 }
  0xf4   :  { %485 = vmatprep.subr.bf16.mxu1 %v547_v0 }
  0xf7   :  { %487 = vmatpush3.bf16.msra.mxu1 %v486_v33 }
 0x1c5   :  { %v209_v27 = vpop.f32.mrb[0].mxu1 }
 0x1c6   :  { %v210_v28 = vadd.f32 %v402_v26, %v209_v27  ;;  %v443_v29 = vpop.f32.mrb[1].mxu1 }
 0x1c8   :  { %v213_v30 = vmax.f32 %v210_v28, 0.0 }
 0x1ca   :  { %453 = vmatmul.mubr.msk.f32.vlgmr.msra.gmra.mrb[2].mxu0 %vm139_vm5, %v213_v30 }
 0x29d   :  { %v293_v35 = vpop.f32.mrb[2].mxu0 }
 0x29e   :  { %v294_v36 = vadd.f32 %v404_v34, %v293_v35  ;;  %v454_v37 = vpop.f32.mrb[3].mxu0 }
 0x2a0   :  { %v297_v38 = vmax.f32 %v294_v36, 0.0 }
 0x2a2   :  { %464 = vmatmul.mubr.msk.f32.vlgmr.msra.gmra.mrb[2].mxu1 %vm139_vm5, %v297_v38 }
 0x375   :  { %v378_v40 = vpop.f32.mrb[2].mxu1 }
 0x376   :  { %v379_v41 = vadd.f32 %v406_v39, %v378_v40  ;;  %v465_v42 = vpop.f32.mrb[3].mxu1 }
 0x378   :  { %383 = vst.msk [vmem:[#allocation5] sm:$0xff] %vm382_vm6, %v379_v41 }
 0x379   :  { %529 = shalt.err (!%p526_p12)
}
 0x37a   :  { %s530_s13 = scalar_lea.hbm %s663_s7, 128 }
 0x37b   :  { %p531_p13 = scmp.ne.s32.totalorder %s663_s7, %s530_s13  ;;  %p534_p0 = scmp.lt.u32.totalorder %s530_s13, %s663_s7 }
 0x37d   :  { %p536_p1 = pnand %p534_p0, %p531_p13 }
 0x37f   :  { %539 = shalt.err (!%p536_p1)
}
 0x380   :  { %393 = dma.vmem_to_hbm [thread:$0]  %s391_s11, 128, %s663_s7, [#allocation4]  }
 0x381   :  { %542 = dma.done.wait [#allocation4], 128  }
 0x382   :  { %543 = vsyncadd [#allocation4], 4294967168 }
 0x383   :  { %397 = vsyncpa [#allocation3], 1 }
 0x384   :  { %398 = vsyncpa [#allocation4], 1 }

</bundles_post_ra>
